<compile_context>
chip_gen: v7x
topology: tpu7x:2x2x1
jax: 0.10.0
libtpu: 0.0.40
codegen_flags: <defaults>
</compile_context>

<pallas_src>
import functools
import math

import jax
import jax.numpy as jnp
from jax.experimental import pallas as pl
from jax.experimental.pallas import tpu as pltpu


def build_pe_table(d_model: int, max_len: int = 5000) -> jnp.ndarray:
    """Sinusoidal PE buffer, shape (max_len, 1, d_model), f32 — identical math to
    the PyTorch module's register_buffer('pe', ...)."""
    position = jnp.arange(max_len, dtype=jnp.float32)[:, None]            # (L, 1)
    div_term = jnp.exp(
        jnp.arange(0, d_model, 2, dtype=jnp.float32)
        * (-math.log(10000.0) / d_model)
    )                                                                      # (D/2,)
    angles = position * div_term                                           # (L, D/2)
    pe = jnp.zeros((max_len, d_model), dtype=jnp.float32)
    pe = pe.at[:, 0::2].set(jnp.sin(angles))
    pe = pe.at[:, 1::2].set(jnp.cos(angles))
    return pe[:, None, :]                                                  # (L, 1, D)


def _pe_add_kernel(x_ref, pe_ref, o_ref, *, reps: int):
    """o = x + pe, with pe replicated `reps` times along the lane axis.

    x_ref / o_ref: (TS, L); pe_ref: (TS, L // reps).  The batch broadcast is a
    lane-dim tile (pure VMEM data movement — no VALU / transcendental work), so
    the kernel stays HBM-bound on v5e, v6e and v7x alike.
    """
    pe = pe_ref[...]
    if reps > 1:
        pe = jnp.tile(pe, (1, reps))
    o_ref[...] = x_ref[...] + pe


def _sublane_pack(dtype) -> int:
    """Rows per vreg for this dtype: 8 for 4-byte, 16 for 2-byte, 32 for 1-byte."""
    return max(8, 32 // jnp.dtype(dtype).itemsize)


def _choose_tile_rows(total_rows: int, row_bytes: int, pack: int,
                      target_block_bytes: int = 4 * 1024 * 1024) -> int:
    """~4 MiB x-tiles, pack-aligned rows, and (when possible) an even number of
    grid steps so v7x's two TensorCores get balanced shares of the parallel axis."""
    if total_rows <= pack:
        return total_rows                       # single full-extent block
    ts = target_block_bytes // max(1, row_bytes)
    ts = max(pack, (ts // pack) * pack)
    ts = min(ts, total_rows)
    steps = -(-total_rows // ts)                # ceil-div
    if steps == 1:
        if total_rows >= 2 * pack:
            steps = 2
    elif steps % 2 == 1:
        steps += 1
    rows_per_step = -(-total_rows // steps)
    ts = -(-rows_per_step // pack) * pack
    return min(ts, total_rows)


def _choose_fold(seq_len: int, lane_width: int) -> int:
    """Smallest r dividing seq_len such that r*lane_width is a multiple of 128."""
    for r in range(1, seq_len + 1):
        if seq_len % r == 0 and (r * lane_width) % 128 == 0:
            return r
    return 1


def positional_encoding_forward(x: jnp.ndarray, pe_table: jnp.ndarray) -> jnp.ndarray:
    """x: (S, B, D); pe_table: (max_len, 1, D) buffer.  Returns x + pe_table[:S]."""
    S, B, D = x.shape
    max_len = pe_table.shape[0]
    assert S <= max_len, "sequence length exceeds max_len"
    assert D % 2 == 0, "d_model must be even (as the PyTorch module requires)"

    pe = pe_table[:S, 0, :]                                    # (S, D), f32
    bd = B * D

    if B > 1 and D % 128 == 0:
        # Lean path: stream pe at (TS, D) (1/(2B) extra HBM read) and replicate
        # across batch inside the kernel (clean vreg-aligned lane tiling).
        fold, reps = 1, B
        x2 = x.reshape(S, bd)
        pe2 = pe.astype(x.dtype)                               # (S, D)
    else:
        # Small / oddly-shaped lane dim (e.g. B*D < 128): pre-broadcast pe over
        # batch (tiny tensors here, so the extra HBM read is negligible) and
        # fold `fold` sequence rows into the lane dim so the output last dim is
        # a multiple of 128 -> unmasked, lane-dense stores.
        reps = 1
        fold = _choose_fold(S, bd)
        # TODO(synk): if no fold yields a 128-multiple lane dim (fold == 1 and
        # bd % 128 != 0), the kernel still runs correctly, just with masked
        # partial stores.
        x2 = x.reshape(S // fold, fold * bd)
        pe2 = (
            jnp.broadcast_to(pe[:, None, :], (S, B, D))
            .astype(x.dtype)
            .reshape(S // fold, fold * bd)
        )

    rows, lanes = x2.shape
    pe_lanes = pe2.shape[1]
    pack = _sublane_pack(x.dtype)
    ts = _choose_tile_rows(rows, lanes * x2.dtype.itemsize, pack)
    grid = (pl.cdiv(rows, ts),)

    kernel = functools.partial(_pe_add_kernel, reps=reps)

    grid_spec = pltpu.PrefetchScalarGridSpec(
        num_scalar_prefetch=0,
        grid=grid,
        in_specs=[
            pl.BlockSpec((ts, lanes), lambda i: (i, 0)),       # x tile (streamed)
            pl.BlockSpec((ts, pe_lanes), lambda i: (i, 0)),    # pe tile (streamed)
        ],
        out_specs=pl.BlockSpec((ts, lanes), lambda i: (i, 0)),
    )

    out2 = pl.pallas_call(
        kernel,
        out_shape=jax.ShapeDtypeStruct((rows, lanes), x.dtype),
        grid_spec=grid_spec,
        compiler_params=pltpu.CompilerParams(
            dimension_semantics=("parallel",),
            vmem_limit_bytes=32 * 1024 * 1024,
        ),
        # TODO(synk): add input_output_aliases={0: 0} when x is donated under jit;
        # left off so the eager-mode reference check below keeps x intact.
    )(x2, pe2)

    return out2.reshape(S, B, D)


if __name__ == "__main__":
    key = jax.random.PRNGKey(0)
    k1, k2 = jax.random.split(key)

    # 1) Small shape consistent with the module: seq=8, batch=2, d_model=32.
    #    Exercises the folded / pre-broadcast path (B*D = 64 < 128 -> fold=2).
    S, B, D = 8, 2, 32
    MAX_LEN = 64
    pe_buf = build_pe_table(D, MAX_LEN)                         # the "registered buffer"
    x = jax.random.normal(k1, (S, B, D), dtype=jnp.float32)
    out = jax.block_until_ready(positional_encoding_forward(x, pe_buf))
    ref = x + pe_buf[:S, :]
    assert out.shape == (S, B, D)
    assert jnp.allclose(out, ref, atol=1e-5, rtol=1e-5), "mismatch vs reference (small)"

    # 2) Transformer-like shape exercising the lean-PE path (D % 128 == 0) and a
    #    multi-step (even) grid with in-kernel batch broadcast.
    S2, B2, D2 = 640, 2, 256
    pe_buf2 = build_pe_table(D2, 5000)
    x2 = jax.random.normal(k2, (S2, B2, D2), dtype=jnp.float32)
    out2 = jax.block_until_ready(positional_encoding_forward(x2, pe_buf2))
    ref2 = x2 + pe_buf2[:S2, :]
    assert jnp.allclose(out2, ref2, atol=1e-5, rtol=1e-5), "mismatch vs reference (large)"

    print("KERNEL_OK")
</pallas_src>

<mosaic_0001>
module attributes {stable_mosaic.version = 11 : i64} {
  func.func @_pe_add_kernel(%arg0: i32, %arg1: memref<4x128xf32, #tpu.memory_space<vmem>>, %arg2: memref<4x128xf32, #tpu.memory_space<vmem>>, %arg3: memref<4x128xf32, #tpu.memory_space<vmem>>) attributes {dimension_semantics = [#tpu.dimension_semantics<parallel>], iteration_bounds = array<i64: 1>, scalar_prefetch = 0 : i64, scratch_operands = 0 : i64, tpu.core_type = #tpu.core_type<tc>, window_params = [{transform_indices = @transform_0, window_bounds = array<i64: 4, 128>}, {transform_indices = @transform_1, window_bounds = array<i64: 4, 128>}, {transform_indices = @transform_2, window_bounds = array<i64: 4, 128>}]} {
    %c0 = arith.constant 0 : index
    %c0_0 = arith.constant 0 : index
    %0 = vector.load %arg2[%c0, %c0_0] : memref<4x128xf32, #tpu.memory_space<vmem>>, vector<4x128xf32>
    %c0_1 = arith.constant 0 : index
    %c0_2 = arith.constant 0 : index
    %1 = vector.load %arg1[%c0_1, %c0_2] : memref<4x128xf32, #tpu.memory_space<vmem>>, vector<4x128xf32>
    %2 = arith.addf %1, %0 : vector<4x128xf32>
    %c0_3 = arith.constant 0 : index
    %c0_4 = arith.constant 0 : index
    %3 = vector.load %arg3[%c0_3, %c0_4] : memref<4x128xf32, #tpu.memory_space<vmem>>, vector<4x128xf32>
    tpu.vector_store %arg3[%c0_3, %c0_4], %2 {strides = array<i32>} : memref<4x128xf32, #tpu.memory_space<vmem>>, vector<4x128xf32>,
    return
  }
  func.func @transform_0(%arg0: i32) -> (i32, i32) {
    %c0_i32 = arith.constant 0 : i32
    %c0_i32_0 = arith.constant 0 : i32
    return %arg0, %c0_i32 : i32, i32
  }
  func.func @transform_1(%arg0: i32) -> (i32, i32) {
    %c0_i32 = arith.constant 0 : i32
    %c0_i32_0 = arith.constant 0 : i32
    return %arg0, %c0_i32 : i32, i32
  }
  func.func @transform_2(%arg0: i32) -> (i32, i32) {
    %c0_i32 = arith.constant 0 : i32
    %c0_i32_0 = arith.constant 0 : i32
    return %arg0, %c0_i32 : i32, i32
  }
}

</mosaic_0001>

<bundles_post_ra>
// kernel: tpu_custom_call.1
= control target key start
LH: loop header
LB: loop body
LE: loop exit
PB: predicated region body
PF: predicated region fallthrough
CT: control target
= control target key end

     0   :  { %7 = vsyncpa [#allocation3], 0  ;;  %s185_s0 = inlined_call_operand.hbm [shape: f32[4,128], index: 0, kind: input, shape index: {}]   ;;  %s186_s1 = inlined_call_operand.hbm [shape: f32[4,128], index: 1, kind: input, shape index: {}]   ;;  %s187_s2 = inlined_call_operand.hbm [shape: f32[4,128], index: 2, kind: output, shape index: {}]  }
   0x1   :  { %8 = vsyncpa [#allocation6], 0 }
   0x2   :  { %9 = vsyncpa [#allocation4], 0  ;;  %s131_s9 = smov [#allocation2]   ;;  %s132_s11 = smov [#allocation5]  }
   0x3   :  { %s16_s10 = sshll.u32 %s131_s9, 4  ;;  %s26_s12 = sshll.u32 %s132_s11, 4  ;;  %s17_s10 = int_to_ptr.vmem [resolvable:$true] %s16_s10  ;;  %s27_s12 = int_to_ptr.vmem [resolvable:$true] %s26_s12 }
   0x4   :  { %s59_s15 = scalar_lea.hbm %s185_s0, 64 }
   0x5   :  { %p60_p0 = scmp.ne.s32.totalorder %s185_s0, %s59_s15  ;;  %p63_p1 = scmp.lt.u32.totalorder %s59_s15, %s185_s0 }
   0x7   :  { %p65_p2 = pnand %p63_p1, %p60_p0 }
   0x9   :  { %68 = shalt.err (!%p65_p2)
}
   0xa   :  { %s69_s20 = scalar_lea.vmem %s17_s10, 64  ;;  %p74_p4 = scmp.lt.s32.totalorder %s17_s10, %s17_s10 }
   0xb   :  { %p70_p3 = scmp.ne.s32.totalorder %s17_s10, %s69_s20  ;;  %p75_p5 = scmp.lt.s32.totalorder %s69_s20, %s69_s20 }
   0xd   :  { %p76_p6 = por %p75_p5, %p74_p4 }
   0xf   :  { %p77_p7 = pnand %p76_p6, %p70_p3 }
  0x11   :  { %80 = shalt.err (!%p77_p7)
}
  0x12   :  { %19 = dma.hbm_to_vmem [thread:$0]  %s185_s0, 64, %s17_s10, [#allocation3]  }
  0x13   :  { %s81_s25 = scalar_lea.hbm %s186_s1, 64 }
  0x14   :  { %p82_p8 = scmp.ne.s32.totalorder %s186_s1, %s81_s25  ;;  %p85_p9 = scmp.lt.u32.totalorder %s81_s25, %s186_s1 }
  0x16   :  { %p87_p10 = pnand %p85_p9, %p82_p8 }
  0x18   :  { %90 = shalt.err (!%p87_p10)
}
  0x19   :  { %s91_s30 = scalar_lea.vmem %s27_s12, 64  ;;  %p96_p12 = scmp.lt.s32.totalorder %s27_s12, %s27_s12 }
  0x1a   :  { %p92_p11 = scmp.ne.s32.totalorder %s27_s12, %s91_s30  ;;  %p97_p13 = scmp.lt.s32.totalorder %s91_s30, %s91_s30 }
  0x1c   :  { %p98_p0 = por %p97_p13, %p96_p12 }
  0x1e   :  { %p99_p1 = pnand %p98_p0, %p92_p11 }
  0x20   :  { %102 = shalt.err (!%p99_p1)
}
  0x21   :  { %29 = dma.hbm_to_vmem [thread:$0]  %s186_s1, 64, %s27_s12, [#allocation6]  }
  0x22   :  { %125 = dma.done.wait [#allocation3], 64  }
  0x23   :  { %126 = vsyncadd [#allocation3], 4294967232 }
  0x24   :  { %127 = dma.done.wait [#allocation6], 64  }
  0x25   :  { %128 = vsyncadd [#allocation6], 4294967232  ;;  %s133_s4 = smov [#allocation7]   ;;  %v36_v0 = vld [vmem:[#allocation5] sm:$0xf] }
  0x26   :  { %s46_s5 = sshll.u32 %s133_s4, 4  ;;  %v37_v1 = vld [vmem:[#allocation2] sm:$0xf]  ;;  %s47_s5 = int_to_ptr.vmem [resolvable:$true] %s46_s5 }
  0x27   :  { %v38_v2 = vadd.f32 %v37_v1, %v36_v0  ;;  %s103_s6 = scalar_lea.vmem %s47_s5, 64  ;;  %p108_p3 = scmp.lt.s32.totalorder %s47_s5, %s47_s5 }
  0x28   :  { %p104_p2 = scmp.ne.s32.totalorder %s47_s5, %s103_s6  ;;  %p109_p4 = scmp.lt.s32.totalorder %s103_s6, %s103_s6 }
  0x29   :  { %39 = vst [vmem:[#allocation7] sm:$0xf] %v38_v2 }
  0x2a   :  { %p110_p5 = por %p109_p4, %p108_p3 }
  0x2c   :  { %p111_p6 = pnand %p110_p5, %p104_p2 }
  0x2e   :  { %114 = shalt.err (!%p111_p6)
}
  0x2f   :  { %s115_s8 = scalar_lea.hbm %s187_s2, 64 }
  0x30   :  { %p116_p7 = scmp.ne.s32.totalorder %s187_s2, %s115_s8  ;;  %p119_p8 = scmp.lt.u32.totalorder %s115_s8, %s187_s2 }
  0x32   :  { %p121_p9 = pnand %p119_p8, %p116_p7 }
  0x34   :  { %124 = shalt.err (!%p121_p9)
}
  0x35   :  { %49 = dma.vmem_to_hbm [thread:$0]  %s47_s5, 64, %s187_s2, [#allocation4]  }
  0x36   :  { %129 = dma.done.wait [#allocation4], 64  }
  0x37   :  { %130 = vsyncadd [#allocation4], 4294967232 }
  0x38   :  { %53 = vsyncpa [#allocation3], 1 }
  0x39   :  { %54 = vsyncpa [#allocation6], 1 }
  0x3a   :  { %55 = vsyncpa [#allocation4], 1 }

</bundles_post_ra>
